<compile_context>
chip_gen: v5e
topology: v5e:2x2
jax: 0.10.0
libtpu: 0.0.40
codegen_flags: <defaults>
</compile_context>

<pallas_src>
import numpy as np
import jax
import jax.numpy as jnp
from jax import lax
from jax.experimental import pallas as pl
from jax.experimental.pallas import tpu as pltpu


# ----------------------------------------------------------------------------
# Mask construction (stand-in for generateFixedWeightMask_PredPrey, which is
# not part of the provided source).
# TODO(synk): exact generateFixedWeightMask_PredPrey not provided; using a
# deterministic 8-neighborhood adjacency (incl. self) for weightMask and the
# identity for diagMask, which matches the (num_pixels, num_pixels) shapes used.
# ----------------------------------------------------------------------------
def generate_fixed_weight_masks(image_size: int):
    n = image_size * image_size
    weight_mask = np.zeros((n, n), dtype=bool)
    for r in range(image_size):
        for c in range(image_size):
            i = r * image_size + c
            for dr in (-1, 0, 1):
                for dc in (-1, 0, 1):
                    rr, cc = r + dr, c + dc
                    if 0 <= rr < image_size and 0 <= cc < image_size:
                        weight_mask[i, rr * image_size + cc] = True
    diag_mask = np.eye(n, dtype=bool)
    edge_mask = np.zeros((n, n), dtype=bool)    # unused in forward
    corner_mask = np.zeros((n, n), dtype=bool)  # unused in forward
    return weight_mask, diag_mask, edge_mask, corner_mask


def _round_up(v: int, m: int) -> int:
    return (v + m - 1) // m * m


# ----------------------------------------------------------------------------
# Pallas kernel: the full iterated propagation (matmul + add + tanh per layer).
# ----------------------------------------------------------------------------
def _make_prop_kernel(num_iters: int):
    def prop_kernel(pred_ref, x_ref, wTs_ref, a_ref, bias_ref, scalar_ref, out_ref):
        u0 = pred_ref[...]                                   # (tb, Np) f32
        u_fix = jnp.where(u0 == -1.0, 0.0, u0)               # u_fix[u_fix == -1] = 0
        s = scalar_ref[0]                                    # SMEM scalar

        # Iteration-invariant term, scaled by `scalar` once (not per layer).  The
        # input-weight matrix is diagonal, so its matvec is a per-lane VPU multiply.
        const_s = (u_fix + bias_ref[...] + x_ref[...] * a_ref[...]) * s

        wTs = wTs_ref[...]                                   # (Np, Np) = (W_eff * scalar).T

        def layer(u):
            # Per-layer critical path: matmul -> add -> tanh (scalar already folded).
            return jnp.tanh(const_s +
                            jnp.dot(u, wTs, preferred_element_type=jnp.float32))

        if num_iters <= 8:
            # Small static trip count -> fully unrolled straight-line code.
            u = u0
            for _ in range(num_iters):
                u = layer(u)
        else:
            # Large trip count: bound live ranges / code size, keep modest unroll.
            u = lax.fori_loop(0, num_iters, lambda _, uu: layer(uu), u0, unroll=2)

        out_ref[...] = u                                     # lane-dense unmasked store

    return prop_kernel


# ----------------------------------------------------------------------------
# One-time parameter preparation (hoisted out of the per-call path).
# ----------------------------------------------------------------------------
def prepare_propagation_params(w_eff, a_diag, bias, scalar):
    """w_eff: (N, N) = w * weightMask; a_diag: (N,) diag of a * inputWeight;
    bias: (N,); scalar: f32.  Returns padded, scalar-folded device arrays."""
    N = w_eff.shape[0]
    Np = _round_up(N, 128)
    scalar = jnp.asarray(scalar, jnp.float32)
    # Fold `scalar` into the hidden weight: u @ (W_eff * s).T == (u @ W_eff.T) * s.
    wT_s = jnp.pad((jnp.asarray(w_eff, jnp.float32) * scalar).T,
                   ((0, Np - N), (0, Np - N)))
    a_p = jnp.pad(jnp.asarray(a_diag, jnp.float32).reshape(1, N),
                  ((0, 0), (0, Np - N)))
    bias_p = jnp.pad(jnp.asarray(bias, jnp.float32).reshape(1, N),
                     ((0, 0), (0, Np - N)))
    s_arr = scalar.reshape(1)
    return {"wT_s": wT_s, "a": a_p, "bias": bias_p, "scalar": s_arr,
            "n": N, "np": Np}


# ----------------------------------------------------------------------------
# Per-call wrapper: pads activations, launches the batched / gridded kernel.
# ----------------------------------------------------------------------------
def propagation_only_shared_pixel(pred, x, params, layers, tb=128):
    """pred, x: (B, N) f32.  params: from prepare_propagation_params."""
    B, N = pred.shape
    assert N == params["n"]
    Np = params["np"]

    # Batch tile: multiple of 8 sublanes; grid over batch so megacore (v7x) can
    # split the work, weight stays resident via constant index_map.
    tb = max(8, (tb // 8) * 8)
    tb = min(tb, _round_up(B, 8))
    Bp = _round_up(B, tb)
    nb = Bp // tb

    pred_p = jnp.pad(jnp.asarray(pred, jnp.float32), ((0, Bp - B), (0, Np - N)))
    x_p = jnp.pad(jnp.asarray(x, jnp.float32), ((0, Bp - B), (0, Np - N)))

    # Scoped-VMEM budget: resident weight (possibly double-buffered) + double-buffered
    # pred/x/out tiles + small vectors + headroom.  Defaults are 16/32/32 MiB on
    # v5e/v6e/v7x, which a dense weight exceeds long before physical VMEM.
    weight_bytes = Np * Np * 4
    io_bytes = 3 * 2 * tb * Np * 4
    vmem_needed = 2 * weight_bytes + io_bytes + 8 * Np * 4 + (1 << 16)
    vmem_limit = int(min(112 << 20, max(2 * vmem_needed, 16 << 20)))

    out_p = pl.pallas_call(
        _make_prop_kernel(layers),
        out_shape=jax.ShapeDtypeStruct((Bp, Np), jnp.float32),
        grid=(nb,),
        in_specs=[
            pl.BlockSpec((tb, Np), lambda i: (i, 0)),        # pred tile
            pl.BlockSpec((tb, Np), lambda i: (i, 0)),        # x tile
            pl.BlockSpec((Np, Np), lambda i: (0, 0)),        # weight: resident
            pl.BlockSpec((1, Np), lambda i: (0, 0)),         # a_diag row
            pl.BlockSpec((1, Np), lambda i: (0, 0)),         # bias row
            pl.BlockSpec(memory_space=pltpu.MemorySpace.SMEM),  # scalar
        ],
        out_specs=pl.BlockSpec((tb, Np), lambda i: (i, 0)),
        compiler_params=pltpu.CompilerParams(
            dimension_semantics=("parallel",),
            vmem_limit_bytes=vmem_limit,
        ),
    )(pred_p, x_p, params["wT_s"], params["a"], params["bias"], params["scalar"])

    return out_p[:B, :N]


# ----------------------------------------------------------------------------
# Pure-JAX reference (mirrors the PyTorch forward exactly, dense matrices).
# ----------------------------------------------------------------------------
def reference_forward(pred, x, w_eff, a_eff, bias, scalar, layers):
    u = pred
    u_fix = jnp.where(pred == -1.0, 0.0, pred)
    for _ in range(layers):
        v = u_fix + u @ w_eff.T + bias[None, :] + x @ a_eff.T
        u = jnp.tanh(v * scalar)
    return u


if __name__ == "__main__":
    # Small, module-consistent shapes.
    image_size = 8
    num_pixels = image_size * image_size          # D_input == hidden == 64
    layers = 3
    batch = 16                                    # padded to 2 x 8-row tiles -> grid=(2,)

    weight_mask, diag_mask, _, _ = generate_fixed_weight_masks(image_size)

    # Deterministic parameter init (mirrors RangePropgation_SharedPixel.__init__).
    key = jax.random.PRNGKey(0)
    k_w, k_a, k_x, k_pred = jax.random.split(key, 4)

    hidden_weight = jnp.asarray(weight_mask, jnp.float32)      # 1 where mask, 0 elsewhere
    input_weight = jnp.asarray(diag_mask, jnp.float32)         # 1 on diag, 0 elsewhere
    bias = jnp.ones((num_pixels,), jnp.float32)                # torch.ones(hidden, 1)
    scalar = jnp.float32(2.0)                                  # torch.ones(1) * 2
    w = jax.random.normal(k_w, (num_pixels, 1), jnp.float32)   # torch.randn(hidden, 1)
    a = jax.random.normal(k_a, (num_pixels, 1), jnp.float32)   # torch.randn(hidden, 1)

    # Effective matrices: w.expand_as(hiddenWeight) * hiddenWeight, etc.
    w_eff = w * hidden_weight                                  # (N, N) dense stencil
    a_eff = a * input_weight                                   # (N, N) diagonal
    a_diag = jnp.diagonal(a_eff)                               # (N,) — only live data in a_eff

    # Inputs: X (image values) and pred (initial hidden), with some -1 entries
    # to exercise the u_fix masking path.
    x = jax.random.normal(k_x, (batch, num_pixels), jnp.float32)
    pred = jax.random.normal(k_pred, (batch, num_pixels), jnp.float32)
    pred = pred.at[:, ::7].set(-1.0)

    # One-time parameter prep (pad / transpose / scalar fold hoisted out of the call).
    params = prepare_propagation_params(w_eff, a_diag, bias, scalar)

    out = propagation_only_shared_pixel(pred, x, params, layers, tb=8)
    out = jax.block_until_ready(out)

    ref = reference_forward(pred, x, w_eff, a_eff, bias, scalar, layers)
    np.testing.assert_allclose(np.asarray(out), np.asarray(ref), rtol=1e-5, atol=1e-5)

    print("KERNEL_OK")
</pallas_src>

<mosaic_0001>
module attributes {stable_mosaic.version = 11 : i64} {
  func.func @prop_kernel(%arg0: i32, %arg1: memref<8x128xf32, #tpu.memory_space<vmem>>, %arg2: memref<8x128xf32, #tpu.memory_space<vmem>>, %arg3: memref<128x128xf32, #tpu.memory_space<vmem>>, %arg4: memref<1x128xf32, #tpu.memory_space<vmem>>, %arg5: memref<1x128xf32, #tpu.memory_space<vmem>>, %arg6: memref<1xf32, #tpu.memory_space<smem>>, %arg7: memref<8x128xf32, #tpu.memory_space<vmem>>) attributes {dimension_semantics = [#tpu.dimension_semantics<parallel>], iteration_bounds = array<i64: 2>, scalar_prefetch = 0 : i64, scratch_operands = 0 : i64, tpu.core_type = #tpu.core_type<tc>, window_params = [{transform_indices = @transform_0, window_bounds = array<i64: 8, 128>}, {transform_indices = @transform_1, window_bounds = array<i64: 8, 128>}, {pipeline_mode = #tpu.pipeline_mode<synchronous>, transform_indices = @transform_2, window_bounds = array<i64: 128, 128>}, {pipeline_mode = #tpu.pipeline_mode<synchronous>, transform_indices = @transform_3, window_bounds = array<i64: 1, 128>}, {pipeline_mode = #tpu.pipeline_mode<synchronous>, transform_indices = @transform_4, window_bounds = array<i64: 1, 128>}, {transform_indices = @transform_5, window_bounds = array<i64: 1>}, {transform_indices = @transform_6, window_bounds = array<i64: 8, 128>}]} {
    %c0 = arith.constant 0 : index
    %c0_0 = arith.constant 0 : index
    %0 = vector.load %arg1[%c0, %c0_0] : memref<8x128xf32, #tpu.memory_space<vmem>>, vector<8x128xf32>
    %cst = arith.constant -1.000000e+00 : f32
    %1 = vector.broadcast %cst : f32 to vector<8x128xf32>
    %2 = arith.cmpf oeq, %0, %1 : vector<8x128xf32>
    %cst_1 = arith.constant 0.000000e+00 : f32
    %3 = vector.broadcast %cst_1 : f32 to vector<8x128xf32>
    %4 = arith.select %2, %3, %0 : vector<8x128xi1>, vector<8x128xf32>
    %c0_2 = arith.constant 0 : index
    %5 = memref.load %arg6[%c0_2] : memref<1xf32, #tpu.memory_space<smem>>
    %c0_3 = arith.constant 0 : index
    %c0_4 = arith.constant 0 : index
    %6 = vector.load %arg5[%c0_3, %c0_4] : memref<1x128xf32, #tpu.memory_space<vmem>>, vector<1x128xf32>
    %7 = vector.broadcast %6 : vector<1x128xf32> to vector<8x128xf32>
    %8 = arith.addf %4, %7 : vector<8x128xf32>
    %c0_5 = arith.constant 0 : index
    %c0_6 = arith.constant 0 : index
    %9 = vector.load %arg2[%c0_5, %c0_6] : memref<8x128xf32, #tpu.memory_space<vmem>>, vector<8x128xf32>
    %c0_7 = arith.constant 0 : index
    %c0_8 = arith.constant 0 : index
    %10 = vector.load %arg4[%c0_7, %c0_8] : memref<1x128xf32, #tpu.memory_space<vmem>>, vector<1x128xf32>
    %11 = vector.broadcast %10 : vector<1x128xf32> to vector<8x128xf32>
    %12 = arith.mulf %9, %11 : vector<8x128xf32>
    %13 = arith.addf %8, %12 : vector<8x128xf32>
    %14 = vector.broadcast %5 : f32 to vector<8x128xf32>
    %15 = arith.mulf %13, %14 : vector<8x128xf32>
    %c0_9 = arith.constant 0 : index
    %c0_10 = arith.constant 0 : index
    %16 = vector.load %arg3[%c0_9, %c0_10] : memref<128x128xf32, #tpu.memory_space<vmem>>, vector<128x128xf32>
    %cst_11 = arith.constant dense<0.000000e+00> : vector<8x128xf32>
    %17 = tpu.matmul %0, %16, %cst_11 {dimension_numbers = #tpu.dot_dimension_numbers<[1], [0], [0], [1], [0, 0, 1, 1], [], []>} : vector<8x128xf32>, vector<128x128xf32>, vector<8x128xf32> -> vector<8x128xf32>
    %18 = arith.addf %15, %17 : vector<8x128xf32>
    %19 = math.tanh %18 : vector<8x128xf32>
    %cst_12 = arith.constant dense<0.000000e+00> : vector<8x128xf32>
    %20 = tpu.matmul %19, %16, %cst_12 {dimension_numbers = #tpu.dot_dimension_numbers<[1], [0], [0], [1], [0, 0, 1, 1], [], []>} : vector<8x128xf32>, vector<128x128xf32>, vector<8x128xf32> -> vector<8x128xf32>
    %21 = arith.addf %15, %20 : vector<8x128xf32>
    %22 = math.tanh %21 : vector<8x128xf32>
    %cst_13 = arith.constant dense<0.000000e+00> : vector<8x128xf32>
    %23 = tpu.matmul %22, %16, %cst_13 {dimension_numbers = #tpu.dot_dimension_numbers<[1], [0], [0], [1], [0, 0, 1, 1], [], []>} : vector<8x128xf32>, vector<128x128xf32>, vector<8x128xf32> -> vector<8x128xf32>
    %24 = arith.addf %15, %23 : vector<8x128xf32>
    %25 = math.tanh %24 : vector<8x128xf32>
    %c0_14 = arith.constant 0 : index
    %c0_15 = arith.constant 0 : index
    %26 = vector.load %arg7[%c0_14, %c0_15] : memref<8x128xf32, #tpu.memory_space<vmem>>, vector<8x128xf32>
    tpu.vector_store %arg7[%c0_14, %c0_15], %25 {strides = array<i32>} : memref<8x128xf32, #tpu.memory_space<vmem>>, vector<8x128xf32>,
    return
  }
  func.func @transform_0(%arg0: i32) -> (i32, i32) {
    %c0_i32 = arith.constant 0 : i32
    %c0_i32_0 = arith.constant 0 : i32
    return %arg0, %c0_i32 : i32, i32
  }
  func.func @transform_1(%arg0: i32) -> (i32, i32) {
    %c0_i32 = arith.constant 0 : i32
    %c0_i32_0 = arith.constant 0 : i32
    return %arg0, %c0_i32 : i32, i32
  }
  func.func @transform_2(%arg0: i32) -> (i32, i32) {
    %c0_i32 = arith.constant 0 : i32
    %c0_i32_0 = arith.constant 0 : i32
    %c0_i32_1 = arith.constant 0 : i32
    return %c0_i32, %c0_i32_0 : i32, i32
  }
  func.func @transform_3(%arg0: i32) -> (i32, i32) {
    %c0_i32 = arith.constant 0 : i32
    %c0_i32_0 = arith.constant 0 : i32
    %c0_i32_1 = arith.constant 0 : i32
    return %c0_i32, %c0_i32_0 : i32, i32
  }
  func.func @transform_4(%arg0: i32) -> (i32, i32) {
    %c0_i32 = arith.constant 0 : i32
    %c0_i32_0 = arith.constant 0 : i32
    %c0_i32_1 = arith.constant 0 : i32
    return %c0_i32, %c0_i32_0 : i32, i32
  }
  func.func @transform_5(%arg0: i32) -> i32 {
    %c0_i32 = arith.constant 0 : i32
    %c0_i32_0 = arith.constant 0 : i32
    return %c0_i32 : i32
  }
  func.func @transform_6(%arg0: i32) -> (i32, i32) {
    %c0_i32 = arith.constant 0 : i32
    %c0_i32_0 = arith.constant 0 : i32
    return %arg0, %c0_i32 : i32, i32
  }
}

</mosaic_0001>

<bundles_post_ra>
// kernel: tpu_custom_call.1
= control target key start
LH: loop header
LB: loop body
LE: loop exit
PB: predicated region body
PF: predicated region fallthrough
CT: control target
= control target key end

     0   :  { %s1020_s0 = inlined_call_operand.hbm [shape: f32[16,128], index: 0, kind: input, shape index: {}]   ;;  %s1021_s1 = inlined_call_operand.hbm [shape: f32[16,128], index: 1, kind: input, shape index: {}]   ;;  %s1022_s2 = inlined_call_operand.hbm [shape: f32[128,128], index: 2, kind: input, shape index: {}]   ;;  %s1023_s3 = inlined_call_operand.vmem [shape: f32[1,128], index: 3, kind: input, shape index: {}]   ;;  %s1024_s4 = inlined_call_operand.vmem [shape: f32[1,128], index: 4, kind: input, shape index: {}]   ;;  %s1025_s5 = inlined_call_operand.<no memory space> [shape: f32[1], index: 5, kind: input, shape index: {}]   ;;  %s1026_s6 = inlined_call_operand.hbm [shape: f32[16,128], index: 6, kind: output, shape index: {}]  }
   0x1   :  { %1030 = sst [smem:[#allocation17_spill]] %s1022_s2 }
   0x2   :  { %11 = sst [smem:[#allocation2]] %s1025_s5 }
   0x3   :  { %12 = vsyncpa [#allocation4], 0 }
   0x4   :  { %14 = vsyncpa [#allocation4 + $0x1], 0 }
   0x5   :  { %15 = vsyncpa [#allocation7], 0 }
   0x6   :  { %17 = vsyncpa [#allocation7 + $0x1], 0 }
   0x7   :  { %18 = vsyncpa [#allocation5], 0 }
   0x8   :  { %20 = vsyncpa [#allocation5 + $0x1], 0  ;;  %s840_s23 = smov 0   ;;  %s842_s24 = smov 0  }
   0x9   :  { %s844_s25 = smov 0   ;;  %s846_s26 = smov 0  }
   0xa LB: > { %1031 = sst [smem:[#allocation14_spill]] %s793_s25  ;;  %s864_s29 = sadd.s32 4294967295, %s797_s26   ;;  %s797_s26 = sphi %s846_s26, %s1042_s26   ;;  %s793_s25 = sphi %s844_s25, %s1044_s25   ;;  %s789_s24 = sphi %s842_s24, %s1046_s24   ;;  %s785_s23 = sphi %s840_s23, %s1045_s23  }
   0xb   : > { %s1032_s2 = sld [smem:[#allocation17_spill]]  ;;  %p545_p0 = scmp.ge.s32.totalorder %s797_s26, 1 }
   0xc   : > { %p47_p1 = scmp.eq.s32.totalorder %s864_s29, 0  ;;  %p193_p2 = scmp.lt.s32.totalorder %s797_s26, 3 }
   0xd   : > { %s799_s7 = smov [#allocation8]   ;;  %s800_s9 = smov 128  }
   0xe   : > { %p869_p3 = pnand %p545_p0, %p193_p2  ;;  %s206_s8 = sshll.u32 %s799_s7, 4  ;;  %s207_s8 = int_to_ptr.vmem [resolvable:$true] %s206_s8 }
   0xf   : > { %s801_s10 = smov 8   ;;  %s544_s11 = sadd.s32 4294967294, %s797_s26  }
  0x10   : > { %p571_p4 = pneg %p869_p3  ;;  %s880_s12 = sadd.s32 1, %s797_s26  }
  0x11   : > { %s204_s28 = sshll.u32 %s1032_s2, 4  ;;  %1034 = sst [smem:[#allocation15_spill]] %s880_s12  ;;  %s205_s28 = int_to_ptr.hbm [resolvable:$true] %s204_s28 }
  0x12   : > { %p572_p6 = pnand %p571_p4, %p47_p1  ;;  %s33_s13 = sadd.s32 1, %s793_s25 }
  0x13   : > { %s30_s14 = ssub.s32 %s797_s26, %s880_s12  ;;  %p40_p7 = scmp.ne.s32.totalorder %s793_s25, %s789_s24 }
  0x14   : > { %574 = dma.hbm_to_vmem [thread:$0]  (!%p572_p6), %s205_s28, 2048, %s207_s8, [#allocation7], %s800_s9, %s800_s9, %s801_s10  }
  0x15   : > { %p31_p8 = scmp.eq.s32.totalorder %s30_s14, 0  ;;  %p41_p9 = scmp.eq.s32.totalorder %s797_s26, 0 }
  0x16   : > { %p46_p10 = scmp.ne.s32.totalorder %s789_s24, %s785_s23  ;;  %p180_p11 = scmp.eq.s32.totalorder %s864_s29, 1 }
  0x17   : > { %s892_s15 = scalar_select %p31_p8, %s793_s25, %s33_s13  }
  0x18   : > { %p894_p12 = por %p41_p9, %p40_p7  ;;  %p900_p13 = por %p47_p1, %p46_p10 }
  0x19   : > { %1035 = sst [smem:[#allocation16_spill]] %s892_s15  ;;  %p904_p0 = por %p180_p11, %p40_p7 }
  0x1a   : > { %p186_p2 = scmp.eq.s32.totalorder %s544_s11, 1  ;;  %p587_p4 = scmp.lt.s32.totalorder %s797_s26, 2 }
  0x1b   : > { %s229_s19 = sand.u32 1, %s793_s25   ;;  %s549_s22 = sshll.u32 %s797_s26, 3 }
  0x1c   : > { %p910_p6 = por %p186_p2, %p46_p10  ;;  %s548_s21 = sshll.u32 %s229_s19, 3 }
  0x1d   : > { %s237_s28 = scalar_lea.hbm %s1020_s0, %s549_s22  ;;  %s233_s8 = scalar_lea.vmem [#allocation3], %s548_s21 }
  0x1e   : > { %s239_s7 = sshll.u32 %s237_s28, 4  ;;  %s241_s9 = sshll.u32 %s233_s8, 4  ;;  %s240_s7 = int_to_ptr.hbm [resolvable:$true] %s239_s7  ;;  %s242_s9 = int_to_ptr.vmem [resolvable:$true] %s241_s9 }
  0x1f   : > { %p920_p7 = pnand %p587_p4, %p894_p12  ;;  %s256_s14 = scalar_lea.hbm %s1021_s1, %s549_s22 }
  0x20   : > { %s248_s2 = sand.u32 1, %s797_s26   ;;  %s230_s15 = scalar_lea.sflag [#allocation4], %s229_s19 }
  0x21   : > { %s663_s5 = sshra.s32 %s240_s7, 4  ;;  %p667_p9 = pneg %p920_p7  ;;  %s664_s5 = int_to_ptr.hbm [resolvable:$true] %s663_s5 }
  0x22   : > { %s665_s27 = scalar_lea.hbm %s664_s5, 8  ;;  %s670_s8 = scalar_lea.hbm %s1020_s0, 16 }
  0x23   : > { %p666_p8 = scmp.ne.s32.totalorder %s664_s5, %s665_s27  ;;  %p671_p12 = scmp.lt.s32.totalorder %s664_s5, %s1020_s0 }
  0x24   : > { %p672_p2 = scmp.lt.s32.totalorder %s670_s8, %s665_s27 }
  0x25   : > { %p668_p10 = pnand %p667_p9, %p666_p8 }
  0x26   : > { %p673_p4 = por %p672_p2, %p671_p12 }
  0x27   : > { %p669_p11 = pneg %p668_p10 }
  0x29   : > { %p674_p5 = pnand %p673_p4, %p669_p11 }
  0x2b   : > { %677 = shalt.err (!%p674_p5)
}
  0x2c   : > { %578 = dma.hbm_to_vmem [thread:$0]  (!%p920_p7), %s240_s7, 128, %s242_s9, %s230_s15  }
  0x2d   : > { %s258_s19 = sshll.u32 %s256_s14, 4  ;;  %s252_s22 = scalar_lea.vmem [#allocation6], %s548_s21  ;;  %s259_s19 = int_to_ptr.hbm [resolvable:$true] %s258_s19 }
  0x2e   : > { %s260_s25 = sshll.u32 %s252_s22, 4  ;;  %s249_s12 = scalar_lea.sflag [#allocation7], %s248_s2  ;;  %s261_s25 = int_to_ptr.vmem [resolvable:$true] %s260_s25 }
  0x2f   : > { %s693_s16 = sshra.s32 %s259_s19, 4  ;;  %s700_s8 = scalar_lea.hbm %s1021_s1, 16  ;;  %s694_s16 = int_to_ptr.hbm [resolvable:$true] %s693_s16 }
  0x30   : > { %s695_s28 = scalar_lea.hbm %s694_s16, 8  ;;  %p701_p5 = scmp.lt.s32.totalorder %s694_s16, %s1021_s1 }
  0x31   : > { %p696_p8 = scmp.ne.s32.totalorder %s694_s16, %s695_s28  ;;  %p702_p11 = scmp.lt.s32.totalorder %s700_s8, %s695_s28 }
  0x33   : > { %p698_p10 = pnand %p696_p8, %p667_p9  ;;  %p703_p2 = por %p702_p11, %p701_p5 }
  0x35   : > { %p699_p12 = pneg %p698_p10 }
  0x37   : > { %p704_p4 = pnand %p703_p2, %p699_p12 }
  0x39   : > { %707 = shalt.err (!%p704_p4)
}
  0x3a   : > { %581 = dma.hbm_to_vmem [thread:$0]  (!%p920_p7), %s259_s19, 128, %s261_s25, %s249_s12  }
  0x3b   : > { %269 = sbr.rel (%p869_p3) target bundleno = 516 (0x204), region = 44  ;;  %s955_s2 = sand.u32 (!%p869_p3), 1, %s789_s24  }
  0x3c   : > { %s958_s21 = sshll.u32 (!%p869_p3), %s955_s2, 3  ;;  %s272_s7 = scalar_lea.sflag (!%p869_p3), [#allocation4], %s955_s2 }
  0x3d   : > { %s275_s9 = scalar_lea.vmem (!%p869_p3), [#allocation3], %s958_s21 }
  0x40   : > { %768 = dma.done.wait (%p900_p13), %s272_s7, 128  }
  0x41   : > { %770 = vsyncadd (%p900_p13), %s272_s7, 4294967168  ;;  %s281_s25 = sand.u32 1, %s864_s29   ;;  %s285_s12 = scalar_lea.vmem [#allocation6], %s958_s21 }
  0x42   : > { %s282_s30 = scalar_lea.sflag [#allocation7], %s281_s25 }
  0x43   : > { %772 = dma.done.wait (%p900_p13), %s282_s30, 128  }
  0x44   : > { %774 = vsyncadd (%p900_p13), %s282_s30, 4294967168 }
  0x45   : > { %776 = dma.done.wait (%p47_p1), [#allocation7], 2048  }
  0x46   : > { %778 = vsyncadd (%p47_p1), [#allocation7], 4294965248  ;;  %v358_v0 = vld [vmem:[#allocation8 + $0x78] sm:$0xff]  ;;  %v357_v1 = vld [vmem:[#allocation8 + $0x70] sm:$0xff]  ;;  %s328_s19 = sld [smem:[#allocation2]]  ;;  %s558_s22 = sshll.u32 %s864_s29, 3 }
  0x47   : > { %359 = vmatpush.msra.mxu0 %v358_v0  ;;  %381 = vmatpush.msra.mxu1 %v358_v0  ;;  %v356_v2 = vld [vmem:[#allocation8 + $0x68] sm:$0xff]  ;;  %v355_v3 = vld [vmem:[#allocation8 + $0x60] sm:$0xff]  ;;  %v354_v4 = vld [vmem:[#allocation8 + $0x58] sm:$0xff]  ;;  %s437_s5 = scalar_lea.hbm %s1026_s6, %s558_s22  ;;  %s324_s27 = scalar_lea.vmem [#allocation9], %s958_s21 }
  0x48   : > { %403 = vmatpush.msra.mxu2 %v358_v0  ;;  %v353_v5 = vld [vmem:[#allocation8 + $0x50] sm:$0xff]  ;;  %v352_v6 = vld [vmem:[#allocation8 + $0x48] sm:$0xff]  ;;  %v351_v7 = vld [vmem:[#allocation8 + $0x40] sm:$0xff]  ;;  %s439_s8 = sshll.u32 %s324_s27, 4  ;;  %s441_s11 = sshll.u32 %s437_s5, 4  ;;  %s440_s8 = int_to_ptr.vmem [resolvable:$true] %s439_s8  ;;  %s442_s11 = int_to_ptr.hbm [resolvable:$true] %s441_s11 }
  0x49   : > { %360 = vmatpush.msra.mxu0 %v357_v1  ;;  %382 = vmatpush.msra.mxu1 %v357_v1  ;;  %v350_v8 = vld [vmem:[#allocation8 + $0x38] sm:$0xff]  ;;  %v349_v9 = vld [vmem:[#allocation8 + $0x30] sm:$0xff]  ;;  %v348_v10 = vld [vmem:[#allocation8 + $0x28] sm:$0xff]  ;;  %s427_s15 = scalar_lea.sflag [#allocation5], %s955_s2  ;;  %s737_s7 = sshra.s32 %s442_s11, 4  ;;  %s738_s7 = int_to_ptr.hbm [resolvable:$true] %s737_s7 }
  0x4a   : > { %404 = vmatpush.msra.mxu2 %v357_v1  ;;  %v347_v11 = vld [vmem:[#allocation8 + $0x20] sm:$0xff]  ;;  %v346_v12 = vld [vmem:[#allocation8 + $0x18] sm:$0xff]  ;;  %v345_v13 = vld [vmem:[#allocation8 + $0x10] sm:$0xff]  ;;  %s743_s30 = scalar_lea.hbm %s1026_s6, 16  ;;  %p744_p7 = scmp.lt.s32.totalorder %s738_s7, %s1026_s6 }
  0x4b   : > { %361 = vmatpush.msra.mxu0 %v356_v2  ;;  %383 = vmatpush.msra.mxu1 %v356_v2  ;;  %v344_v14 = vld [vmem:[#allocation8 + $0x8] sm:$0xff]  ;;  %v343_v15 = vld [vmem:[#allocation8] sm:$0xff]  ;;  %v334_v20 = vld [vmem:[%s285_s12] sm:$0xff] }
  0x4c   : > { %405 = vmatpush.msra.mxu2 %v356_v2  ;;  %v325_v16 = vld [vmem:[%s275_s9] sm:$0xff]  ;;  %v341_v24 = vstv %s328_s19  ;;  %s739_s9 = scalar_lea.hbm %s738_s7, 8 }
  0x4d   : > { %362 = vmatpush.msra.mxu0 %v355_v3  ;;  %384 = vmatpush.msra.mxu1 %v355_v3  ;;  %vm326_vm0 = vcmp.eq.f32.partialorder %v325_v16, -1.0  ;;  %v625_v17 = vld [vmem:[%s1024_s4] ss:$0 sm:$0xff]  ;;  %p740_p1 = scmp.ne.s32.totalorder %s738_s7, %s739_s9  ;;  %p745_p9 = scmp.lt.s32.totalorder %s743_s30, %s739_s9 }
  0x4e   : > { %406 = vmatpush.msra.mxu2 %v355_v3  ;;  %v626_v18 = vld [vmem:[%s1023_s3] ss:$0 sm:$0xff]  ;;  %v327_v19 = vsel %vm326_vm0, 0.0, %v325_v16 }
  0x4f   : > { %363 = vmatpush.msra.mxu0 %v354_v4  ;;  %385 = vmatpush.msra.mxu1 %v354_v4  ;;  %v333_v21 = vadd.f32 %v625_v17, %v327_v19  ;;  %v339_v22 = vmul.f32 %v626_v18, %v334_v20  ;;  %p741_p3 = pnand %p740_p1, %p904_p0  ;;  %p746_p8 = por %p745_p9, %p744_p7 }
  0x50   : > { %407 = vmatpush.msra.mxu2 %v354_v4 }
  0x51   : > { %364 = vmatpush.msra.mxu0 %v353_v5  ;;  %386 = vmatpush.msra.mxu1 %v353_v5  ;;  %v340_v23 = vadd.f32 %v339_v22, %v333_v21  ;;  %p742_p13 = pneg %p741_p3 }
  0x52   : > { %408 = vmatpush.msra.mxu2 %v353_v5 }
  0x53   : > { %365 = vmatpush.msra.mxu0 %v352_v6  ;;  %387 = vmatpush.msra.mxu1 %v352_v6  ;;  %v342_v25 = vmul.f32 %v341_v24, %v340_v23  ;;  %p747_p10 = pnand %p746_p8, %p742_p13 }
  0x54   : > { %409 = vmatpush.msra.mxu2 %v352_v6 }
  0x55   : > { %366 = vmatpush.msra.mxu0 %v351_v7  ;;  %388 = vmatpush.msra.mxu1 %v351_v7 }
  0x56   : > { %410 = vmatpush.msra.mxu2 %v351_v7 }
  0x57   : > { %367 = vmatpush.msra.mxu0 %v350_v8  ;;  %389 = vmatpush.msra.mxu1 %v350_v8 }
  0x58   : > { %411 = vmatpush.msra.mxu2 %v350_v8 }
  0x59   : > { %368 = vmatpush.msra.mxu0 %v349_v9  ;;  %390 = vmatpush.msra.mxu1 %v349_v9 }
  0x5a   : > { %412 = vmatpush.msra.mxu2 %v349_v9 }
  0x5b   : > { %369 = vmatpush.msra.mxu0 %v348_v10  ;;  %391 = vmatpush.msra.mxu1 %v348_v10 }
  0x5c   : > { %413 = vmatpush.msra.mxu2 %v348_v10 }
  0x5d   : > { %370 = vmatpush.msra.mxu0 %v347_v11  ;;  %392 = vmatpush.msra.mxu1 %v347_v11 }
  0x5e   : > { %414 = vmatpush.msra.mxu2 %v347_v11 }
  0x5f   : > { %371 = vmatpush.msra.mxu0 %v346_v12  ;;  %393 = vmatpush.msra.mxu1 %v346_v12 }
  0x60   : > { %415 = vmatpush.msra.mxu2 %v346_v12 }
  0x61   : > { %372 = vmatpush.msra.mxu0 %v345_v13  ;;  %394 = vmatpush.msra.mxu1 %v345_v13 }
  0x62   : > { %416 = vmatpush.msra.mxu2 %v345_v13 }
  0x63   : > { %373 = vmatpush.msra.mxu0 %v344_v14  ;;  %395 = vmatpush.msra.mxu1 %v344_v14 }
  0x64   : > { %417 = vmatpush.msra.mxu2 %v344_v14 }
  0x65   : > { %374 = vmatpush.msra.mxu0 %v343_v15  ;;  %396 = vmatpush.msra.mxu1 %v343_v15 }
  0x66   : > { %375 = vmatmul.f32.vlgmr.msra.gmra.mxu0 %v325_v16  ;;  %418 = vmatpush.msra.mxu2 %v343_v15 }
  0xe3   : > { %v376_v26 = vpop.f32.mrf.mxu0 }
  0xe4   : > { %v379_v27 = vadd.f32 %v376_v26, %v342_v25 }
  0xe6   : > { %627 = vtanh.f32 %v379_v27 }
  0xec   : > { %v628_v28 = vpop.eup %627 }
  0xed   : > { %397 = vmatmul.f32.vlgmr.msra.gmra.mxu1 %v628_v28 }
 0x16a   : > { %v398_v29 = vpop.f32.mrf.mxu1 }
 0x16b   : > { %v401_v30 = vadd.f32 %v398_v29, %v342_v25 }
 0x16d   : > { %629 = vtanh.f32 %v401_v30 }
 0x173   : > { %v630_v31 = vpop.eup %629 }
 0x174   : > { %419 = vmatmul.f32.vlgmr.msra.gmra.mxu2 %v630_v31 }
 0x1f7   : > { %v420_v32 = vpop.f32.mrf.mxu2 }
 0x1f8   : > { %v423_v33 = vadd.f32 %v420_v32, %v342_v25 }
 0x1fa   : > { %631 = vtanh.f32 %v423_v33 }
 0x200   : > { %v632_v34 = vpop.eup %631 }
 0x201   : > { %425 = vst [vmem:[%s324_s27] sm:$0xff] %v632_v34 }
 0x202   : > { %750 = shalt.err (!%p747_p10)
}
 0x203   : > { %569 = dma.vmem_to_hbm [thread:$0]  (%p904_p0), %s440_s8, 128, %s442_s11, %s427_s15  }
 0x204 PF: > { %s453_s2 = sand.u32 1, %s785_s23   ;;  %p1041_p12 = scmp.ge.s32.totalorder %s797_s26, 2 }
 0x205   : > { %s454_s17 = scalar_lea.sflag [#allocation5], %s453_s2 }
 0x206   : > { %p583_p5 = pnand %p1041_p12, %p910_p6 }
 0x208   : > { %p584_p11 = pneg %p583_p5 }
 0x20a   : > { %780 = dma.done.wait (%p584_p11), %s454_s17, 128  }
 0x20b   : > { %782 = vsyncadd (%p584_p11), %s454_s17, 4294967168  ;;  %s1042_s26 = sld [smem:[#allocation15_spill]]  ;;  %s1045_s23 = smov %s789_s24 }
 0x20c   : > { %s1043_s10 = sld [smem:[#allocation14_spill]] }
 0x20d   : > { %s1044_s25 = sld [smem:[#allocation16_spill]] }
 0x211   : > { %p23_p2 = scmp.ge.s32.totalorder %s1042_s26, 4  }
 0x212   : > { %s1046_s24 = smov %s1043_s10 }
 0x213   :  { %25 = sbr.rel (!%p23_p2) target bundleno = 10 (0xa), region = 106 }
 0x218   :  { %460 = vsyncpa [#allocation4], 1 }
 0x219   :  { %462 = vsyncpa [#allocation4 + $0x1], 1 }
 0x21a   :  { %463 = vsyncpa [#allocation7], 1 }
 0x21b   :  { %465 = vsyncpa [#allocation7 + $0x1], 1 }
 0x21c   :  { %466 = vsyncpa [#allocation5], 1 }
 0x21d   :  { %468 = vsyncpa [#allocation5 + $0x1], 1 }

</bundles_post_ra>
